<compile_context>
chip_gen: v5e
topology: v5e:2x2
jax: 0.10.0
libtpu: 0.0.40
codegen_flags: <defaults>
</compile_context>

<pallas_src>
import functools

import jax
import jax.numpy as jnp
from jax.experimental import pallas as pl
from jax.experimental.pallas import tpu as pltpu

LANE = 128
SUBLANE = 8


def _cdiv(a, b):
    return -(-a // b)


def _round_up(x, m):
    return ((x + m - 1) // m) * m


def _vmem_capacity_bytes():
    try:
        return int(pltpu.get_tpu_info().vmem_capacity_bytes)
    except Exception:
        return 64 * 1024 * 1024  # conservative: v7x per-TensorCore VMEM


def _resident_spec(shape):
    """Full-array VMEM-resident spec; single-buffered (constant index_map)."""
    idx = lambda i: (0,) * len(shape)
    try:
        return pl.BlockSpec(shape, idx, pipeline_mode=pl.Buffered(1))
    except TypeError:  # older Pallas without pipeline_mode support
        return pl.BlockSpec(shape, idx)


# --------------------------------------------------------------------------
# Kernels
# --------------------------------------------------------------------------
def _fused_mlp_kernel(*refs, n_layers, compute_dtype):
    """Whole MLP for one batch tile; intermediates stay in VMEM/vregs.

    refs = (x_ref, w0, b0, w1, b1, ..., w_{L-1}, b_{L-1}, o_ref)
    """
    x_ref, o_ref = refs[0], refs[-1]
    h = x_ref[...].astype(compute_dtype)
    for l in range(n_layers):  # static unrolled layer loop
        w_ref = refs[1 + 2 * l]
        b_ref = refs[2 + 2 * l]
        y = jnp.dot(h, w_ref[...], preferred_element_type=jnp.float32)
        y = y + b_ref[...].astype(jnp.float32)
        if l < n_layers - 1:
            y = jnp.maximum(y, 0.01 * y)     # leaky_relu, default slope 0.01
            h = y.astype(compute_dtype)      # carry activation in compute dtype
        else:
            h = y
    o_ref[...] = h.astype(o_ref.dtype)


def _layer_kernel(x_ref, w_ref, b_ref, o_ref, *, apply_act, compute_dtype):
    """Single Linear (+ leaky_relu) for the layer-by-layer VMEM fallback."""
    h = x_ref[...].astype(compute_dtype)
    y = jnp.dot(h, w_ref[...], preferred_element_type=jnp.float32)
    y = y + b_ref[...].astype(jnp.float32)
    if apply_act:
        y = jnp.maximum(y, 0.01 * y)
    o_ref[...] = y.astype(o_ref.dtype)


# --------------------------------------------------------------------------
# Parameter preparation (hoisted OUT of the per-call path)
# --------------------------------------------------------------------------
def init_mlp_params(key, input_dim, hidden_dims, output_dim, dtype=jnp.float32):
    """nn.Linear-style init; weights stored transposed as [in, out]."""
    in_dims = [input_dim] + list(hidden_dims)
    out_dims = list(hidden_dims) + [output_dim]
    params = []
    for di, do in zip(in_dims, out_dims):
        kw, kb, key = jax.random.split(key, 3)
        bound = 1.0 / float(di) ** 0.5  # PyTorch default U(-1/sqrt(fan_in), +)
        w = jax.random.uniform(kw, (di, do), dtype, -bound, bound)
        b = jax.random.uniform(kb, (do,), dtype, -bound, bound)
        params.append((w, b))
    return params


def prepare_mlp_params(params, compute_dtype=jnp.bfloat16):
    """Pad each layer to its own 128-multiple and cast weights to compute_dtype.

    Done once at init; per-layer padding avoids the O(max_dim^2) waste of a
    homogeneous [L, Dmax, Dmax] stack for heterogeneous widths.  Zero padding
    is semantics-preserving (leaky_relu(0) == 0).  Bias is kept f32 (tiny) and
    added to the f32 accumulator.
    """
    layers = []
    for w, b in params:
        di, do = w.shape
        dip, dop = _round_up(di, LANE), _round_up(do, LANE)
        wp = jnp.zeros((dip, dop), compute_dtype).at[:di, :do].set(
            w.astype(compute_dtype))
        bp = jnp.zeros((1, dop), jnp.float32).at[0, :do].set(
            b.astype(jnp.float32))
        layers.append((wp, bp))
    return {
        "layers": layers,
        "out_dim": params[-1][0].shape[1],
        "compute_dtype": compute_dtype,
    }


# --------------------------------------------------------------------------
# Forward
# --------------------------------------------------------------------------
def _choose_batch_tile(B, batch_tile):
    batch_tile = max(SUBLANE, _round_up(batch_tile, SUBLANE))
    b8 = _round_up(B, SUBLANE)
    tb = min(batch_tile, b8)
    if b8 > SUBLANE:
        # keep >=2 grid steps when B allows so the "parallel" axis can use
        # both TensorCores on v7x (near-neutral on single-TC v5e/v6e)
        tb = min(tb, _round_up(_cdiv(b8, 2), SUBLANE))
    n_tiles = _cdiv(b8, tb)
    tb = _round_up(_cdiv(b8, n_tiles), SUBLANE)  # avoid near-doubling padded batch
    return tb, n_tiles * tb


def _fused_vmem_estimate(tb, layers, x_dtype, out_dtype):
    wb = sum(w.size * w.dtype.itemsize + b.size * b.dtype.itemsize
             for w, b in layers)                            # Buffered(1): one copy
    dip0 = layers[0][0].shape[0]
    dopl = layers[-1][0].shape[1]
    act_io = (2 * tb * dip0 * jnp.dtype(x_dtype).itemsize
              + 2 * tb * dopl * jnp.dtype(out_dtype).itemsize)  # double-buffered I/O
    max_d = max(max(w.shape) for w, _ in layers)
    cbytes = layers[0][0].dtype.itemsize
    temps = 2 * tb * max_d * (4 + cbytes)                   # f32 acc + cdtype h, slack
    return wb + act_io + temps


def _fused_forward(x_in, layers, tb, b_pad, compute_dtype, out_dtype,
                   budget, est):
    dip0 = layers[0][0].shape[0]
    dopl = layers[-1][0].shape[1]
    in_specs = [pl.BlockSpec((tb, dip0), lambda i: (i, 0))]
    args = [x_in]
    for w, b in layers:
        in_specs.append(_resident_spec(w.shape))
        in_specs.append(_resident_spec(b.shape))
        args.extend((w, b))
    vmem_limit = int(min(budget, max(2 * est, 32 * 1024 * 1024)))
    kernel = functools.partial(_fused_mlp_kernel, n_layers=len(layers),
                               compute_dtype=compute_dtype)
    return pl.pallas_call(
        kernel,
        out_shape=jax.ShapeDtypeStruct((b_pad, dopl), out_dtype),
        grid=(b_pad // tb,),
        in_specs=in_specs,
        out_specs=pl.BlockSpec((tb, dopl), lambda i: (i, 0)),
        compiler_params=pltpu.CompilerParams(
            dimension_semantics=("parallel",),
            vmem_limit_bytes=vmem_limit,
        ),
    )(*args)


def _layerwise_forward(x_in, layers, tb, b_pad, compute_dtype, out_dtype, budget):
    # Fallback when the whole weight stack does not fit VMEM (e.g. v7x 64 MiB).
    # TODO(synk): K/N-tile an individual layer if a single layer exceeds VMEM.
    h = x_in
    n_layers = len(layers)
    for l, (w, b) in enumerate(layers):
        last = l == n_layers - 1
        dip, dop = w.shape
        o_dtype = out_dtype if last else compute_dtype
        kernel = functools.partial(_layer_kernel, apply_act=not last,
                                   compute_dtype=compute_dtype)
        h = pl.pallas_call(
            kernel,
            out_shape=jax.ShapeDtypeStruct((b_pad, dop), o_dtype),
            grid=(b_pad // tb,),
            in_specs=[pl.BlockSpec((tb, dip), lambda i: (i, 0)),
                      _resident_spec(w.shape),
                      _resident_spec(b.shape)],
            out_specs=pl.BlockSpec((tb, dop), lambda i: (i, 0)),
            compiler_params=pltpu.CompilerParams(
                dimension_semantics=("parallel",),
                vmem_limit_bytes=int(budget),
            ),
        )(h, w, b)
    return h


def mlp_forward(x, prepared, *, batch_tile=512):
    """MLP forward. `prepared` comes from prepare_mlp_params (built once)."""
    layers = prepared["layers"]
    out_dim = prepared["out_dim"]
    compute_dtype = prepared["compute_dtype"]
    B, Din = x.shape
    dip0 = layers[0][0].shape[0]
    dopl = layers[-1][0].shape[1]

    tb, b_pad = _choose_batch_tile(B, batch_tile)

    # Fast path: skip host-side activation padding when shapes already conform.
    if B == b_pad and Din == dip0:
        x_in = x
    else:
        x_in = jnp.zeros((b_pad, dip0), x.dtype).at[:B, :Din].set(x)

    vmem_cap = _vmem_capacity_bytes()
    budget = int(0.70 * vmem_cap)  # generation-aware ceiling (v7x: 64 MiB/TC)
    est = _fused_vmem_estimate(tb, layers, x.dtype, x.dtype)

    if est <= budget:
        out_pad = _fused_forward(x_in, layers, tb, b_pad, compute_dtype,
                                 x.dtype, budget, est)
    else:
        out_pad = _layerwise_forward(x_in, layers, tb, b_pad, compute_dtype,
                                     x.dtype, budget)

    if B == b_pad and out_dim == dopl:
        return out_pad
    return out_pad[:B, :out_dim]


# --------------------------------------------------------------------------
# Reference + test
# --------------------------------------------------------------------------
def mlp_reference(x, params):
    n = len(params)
    for i, (w, b) in enumerate(params):
        x = x @ w + b
        if i < n - 1:
            x = jnp.where(x > 0, x, 0.01 * x)
    return x


if __name__ == "__main__":
    key = jax.random.PRNGKey(0)
    k_x, k_x2, k_p = jax.random.split(key, 3)

    input_dim, hidden_dims, output_dim = 32, [64, 48], 16
    params = init_mlp_params(k_p, input_dim, hidden_dims, output_dim)

    # Built ONCE (hoisted out of the per-call path).
    prep_bf16 = prepare_mlp_params(params)                          # default: bf16 MXU
    prep_f32 = prepare_mlp_params(params, compute_dtype=jnp.float32)  # parity path

    # Case 1: small batch (single grid step).
    x = jax.random.normal(k_x, (8, input_dim), jnp.float32)
    ref = mlp_reference(x, params)

    out_f32 = jax.block_until_ready(mlp_forward(x, prep_f32))
    assert out_f32.shape == (8, output_dim)
    assert jnp.allclose(out_f32, ref, atol=1e-4, rtol=1e-4)

    out_bf16 = jax.block_until_ready(mlp_forward(x, prep_bf16))
    assert out_bf16.shape == (8, output_dim)
    assert jnp.allclose(out_bf16, ref, atol=5e-2, rtol=5e-2)  # bf16 weights/compute

    # Case 2: batch exercising >1 grid step and batch padding.
    x2 = jax.random.normal(k_x2, (24, input_dim), jnp.float32)
    ref2 = mlp_reference(x2, params)
    out2 = jax.block_until_ready(mlp_forward(x2, prep_f32))
    assert out2.shape == (24, output_dim)
    assert jnp.allclose(out2, ref2, atol=1e-4, rtol=1e-4)

    print("KERNEL_OK")
</pallas_src>

<mosaic_0001>
module attributes {stable_mosaic.version = 11 : i64} {
  func.func @_fused_mlp_kernel(%arg0: i32, %arg1: memref<8x128xf32, #tpu.memory_space<vmem>>, %arg2: memref<128x128xf32, #tpu.memory_space<vmem>>, %arg3: memref<1x128xf32, #tpu.memory_space<vmem>>, %arg4: memref<128x128xf32, #tpu.memory_space<vmem>>, %arg5: memref<1x128xf32, #tpu.memory_space<vmem>>, %arg6: memref<128x128xf32, #tpu.memory_space<vmem>>, %arg7: memref<1x128xf32, #tpu.memory_space<vmem>>, %arg8: memref<8x128xf32, #tpu.memory_space<vmem>>) attributes {dimension_semantics = [#tpu.dimension_semantics<parallel>], iteration_bounds = array<i64: 1>, scalar_prefetch = 0 : i64, scratch_operands = 0 : i64, tpu.core_type = #tpu.core_type<tc>, window_params = [{transform_indices = @transform_0, window_bounds = array<i64: 8, 128>}, {pipeline_mode = #tpu.pipeline_mode<synchronous>, transform_indices = @transform_1, window_bounds = array<i64: 128, 128>}, {pipeline_mode = #tpu.pipeline_mode<synchronous>, transform_indices = @transform_2, window_bounds = array<i64: 1, 128>}, {pipeline_mode = #tpu.pipeline_mode<synchronous>, transform_indices = @transform_3, window_bounds = array<i64: 128, 128>}, {pipeline_mode = #tpu.pipeline_mode<synchronous>, transform_indices = @transform_4, window_bounds = array<i64: 1, 128>}, {pipeline_mode = #tpu.pipeline_mode<synchronous>, transform_indices = @transform_5, window_bounds = array<i64: 128, 128>}, {pipeline_mode = #tpu.pipeline_mode<synchronous>, transform_indices = @transform_6, window_bounds = array<i64: 1, 128>}, {transform_indices = @transform_7, window_bounds = array<i64: 8, 128>}]} {
    %c0 = arith.constant 0 : index
    %c0_0 = arith.constant 0 : index
    %0 = vector.load %arg1[%c0, %c0_0] : memref<8x128xf32, #tpu.memory_space<vmem>>, vector<8x128xf32>
    %c0_1 = arith.constant 0 : index
    %c0_2 = arith.constant 0 : index
    %1 = vector.load %arg2[%c0_1, %c0_2] : memref<128x128xf32, #tpu.memory_space<vmem>>, vector<128x128xf32>
    %cst = arith.constant dense<0.000000e+00> : vector<8x128xf32>
    %2 = tpu.matmul %0, %1, %cst {dimension_numbers = #tpu.dot_dimension_numbers<[1], [0], [0], [1], [0, 0, 1, 1], [], []>} : vector<8x128xf32>, vector<128x128xf32>, vector<8x128xf32> -> vector<8x128xf32>
    %c0_3 = arith.constant 0 : index
    %c0_4 = arith.constant 0 : index
    %3 = vector.load %arg3[%c0_3, %c0_4] : memref<1x128xf32, #tpu.memory_space<vmem>>, vector<1x128xf32>
    %4 = vector.broadcast %3 : vector<1x128xf32> to vector<8x128xf32>
    %5 = arith.addf %2, %4 : vector<8x128xf32>
    %cst_5 = arith.constant 0.00999999977 : f32
    %6 = vector.broadcast %cst_5 : f32 to vector<8x128xf32>
    %7 = arith.mulf %6, %5 : vector<8x128xf32>
    %8 = arith.maximumf %5, %7 : vector<8x128xf32>
    %c0_6 = arith.constant 0 : index
    %c0_7 = arith.constant 0 : index
    %9 = vector.load %arg4[%c0_6, %c0_7] : memref<128x128xf32, #tpu.memory_space<vmem>>, vector<128x128xf32>
    %cst_8 = arith.constant dense<0.000000e+00> : vector<8x128xf32>
    %10 = tpu.matmul %8, %9, %cst_8 {dimension_numbers = #tpu.dot_dimension_numbers<[1], [0], [0], [1], [0, 0, 1, 1], [], []>} : vector<8x128xf32>, vector<128x128xf32>, vector<8x128xf32> -> vector<8x128xf32>
    %c0_9 = arith.constant 0 : index
    %c0_10 = arith.constant 0 : index
    %11 = vector.load %arg5[%c0_9, %c0_10] : memref<1x128xf32, #tpu.memory_space<vmem>>, vector<1x128xf32>
    %12 = vector.broadcast %11 : vector<1x128xf32> to vector<8x128xf32>
    %13 = arith.addf %10, %12 : vector<8x128xf32>
    %cst_11 = arith.constant 0.00999999977 : f32
    %14 = vector.broadcast %cst_11 : f32 to vector<8x128xf32>
    %15 = arith.mulf %14, %13 : vector<8x128xf32>
    %16 = arith.maximumf %13, %15 : vector<8x128xf32>
    %c0_12 = arith.constant 0 : index
    %c0_13 = arith.constant 0 : index
    %17 = vector.load %arg6[%c0_12, %c0_13] : memref<128x128xf32, #tpu.memory_space<vmem>>, vector<128x128xf32>
    %cst_14 = arith.constant dense<0.000000e+00> : vector<8x128xf32>
    %18 = tpu.matmul %16, %17, %cst_14 {dimension_numbers = #tpu.dot_dimension_numbers<[1], [0], [0], [1], [0, 0, 1, 1], [], []>} : vector<8x128xf32>, vector<128x128xf32>, vector<8x128xf32> -> vector<8x128xf32>
    %c0_15 = arith.constant 0 : index
    %c0_16 = arith.constant 0 : index
    %19 = vector.load %arg7[%c0_15, %c0_16] : memref<1x128xf32, #tpu.memory_space<vmem>>, vector<1x128xf32>
    %20 = vector.broadcast %19 : vector<1x128xf32> to vector<8x128xf32>
    %21 = arith.addf %18, %20 : vector<8x128xf32>
    %c0_17 = arith.constant 0 : index
    %c0_18 = arith.constant 0 : index
    %22 = vector.load %arg8[%c0_17, %c0_18] : memref<8x128xf32, #tpu.memory_space<vmem>>, vector<8x128xf32>
    tpu.vector_store %arg8[%c0_17, %c0_18], %21 {strides = array<i32>} : memref<8x128xf32, #tpu.memory_space<vmem>>, vector<8x128xf32>,
    return
  }
  func.func @transform_0(%arg0: i32) -> (i32, i32) {
    %c0_i32 = arith.constant 0 : i32
    %c0_i32_0 = arith.constant 0 : i32
    return %arg0, %c0_i32 : i32, i32
  }
  func.func @transform_1(%arg0: i32) -> (i32, i32) {
    %c0_i32 = arith.constant 0 : i32
    %c0_i32_0 = arith.constant 0 : i32
    %c0_i32_1 = arith.constant 0 : i32
    return %c0_i32, %c0_i32_0 : i32, i32
  }
  func.func @transform_2(%arg0: i32) -> (i32, i32) {
    %c0_i32 = arith.constant 0 : i32
    %c0_i32_0 = arith.constant 0 : i32
    %c0_i32_1 = arith.constant 0 : i32
    return %c0_i32, %c0_i32_0 : i32, i32
  }
  func.func @transform_3(%arg0: i32) -> (i32, i32) {
    %c0_i32 = arith.constant 0 : i32
    %c0_i32_0 = arith.constant 0 : i32
    %c0_i32_1 = arith.constant 0 : i32
    return %c0_i32, %c0_i32_0 : i32, i32
  }
  func.func @transform_4(%arg0: i32) -> (i32, i32) {
    %c0_i32 = arith.constant 0 : i32
    %c0_i32_0 = arith.constant 0 : i32
    %c0_i32_1 = arith.constant 0 : i32
    return %c0_i32, %c0_i32_0 : i32, i32
  }
  func.func @transform_5(%arg0: i32) -> (i32, i32) {
    %c0_i32 = arith.constant 0 : i32
    %c0_i32_0 = arith.constant 0 : i32
    %c0_i32_1 = arith.constant 0 : i32
    return %c0_i32, %c0_i32_0 : i32, i32
  }
  func.func @transform_6(%arg0: i32) -> (i32, i32) {
    %c0_i32 = arith.constant 0 : i32
    %c0_i32_0 = arith.constant 0 : i32
    %c0_i32_1 = arith.constant 0 : i32
    return %c0_i32, %c0_i32_0 : i32, i32
  }
  func.func @transform_7(%arg0: i32) -> (i32, i32) {
    %c0_i32 = arith.constant 0 : i32
    %c0_i32_0 = arith.constant 0 : i32
    return %arg0, %c0_i32 : i32, i32
  }
}

</mosaic_0001>

<bundles_post_ra>
// kernel: tpu_custom_call.1
= control target key start
LH: loop header
LB: loop body
LE: loop exit
PB: predicated region body
PF: predicated region fallthrough
CT: control target
= control target key end

     0   :  { %12 = vsyncpa [#allocation3], 0  ;;  %s442_s0 = inlined_call_operand.hbm [shape: f32[8,128], index: 0, kind: input, shape index: {}]   ;;  %s443_s1 = inlined_call_operand.hbm [shape: f32[128,128], index: 1, kind: input, shape index: {}]   ;;  %s444_s2 = inlined_call_operand.vmem [shape: f32[1,128], index: 2, kind: input, shape index: {}]   ;;  %s445_s3 = inlined_call_operand.hbm [shape: f32[128,128], index: 3, kind: input, shape index: {}]   ;;  %s446_s4 = inlined_call_operand.vmem [shape: f32[1,128], index: 4, kind: input, shape index: {}]   ;;  %s447_s5 = inlined_call_operand.hbm [shape: f32[128,128], index: 5, kind: input, shape index: {}]   ;;  %s448_s6 = inlined_call_operand.vmem [shape: f32[1,128], index: 6, kind: input, shape index: {}]   ;;  %s449_s7 = inlined_call_operand.hbm [shape: f32[8,128], index: 7, kind: output, shape index: {}]  }
   0x1   :  { %13 = vsyncpa [#allocation6], 0 }
   0x2   :  { %14 = vsyncpa [#allocation9], 0  ;;  %s31_s26 = sshll.u32 %s443_s1, 4  ;;  %s32_s26 = int_to_ptr.hbm [resolvable:$true] %s31_s26 }
   0x3   :  { %15 = vsyncpa [#allocation4], 0  ;;  %s371_s27 = smov [#allocation5]   ;;  %s21_s8 = sshll.u32 %s442_s0, 4  ;;  %s22_s8 = int_to_ptr.hbm [resolvable:$true] %s21_s8 }
   0x4   :  { %s33_s28 = sshll.u32 %s371_s27, 4  ;;  %s372_s9 = smov 128   ;;  %s34_s28 = int_to_ptr.vmem [resolvable:$true] %s33_s28 }
   0x5   :  { %s373_s10 = smov 8   ;;  %s374_s11 = smov [#allocation2]  }
   0x6   :  { %39 = dma.hbm_to_vmem [thread:$0]  %s32_s26, 2048, %s34_s28, [#allocation6], %s372_s9, %s372_s9, %s373_s10  }
   0x7   :  { %s23_s12 = sshll.u32 %s374_s11, 4  ;;  %s46_s15 = sshll.u32 %s445_s3, 4  ;;  %s24_s12 = int_to_ptr.vmem [resolvable:$true] %s23_s12  ;;  %s47_s15 = int_to_ptr.hbm [resolvable:$true] %s46_s15 }
   0x8   :  { %26 = dma.hbm_to_vmem [thread:$0]  %s22_s8, 128, %s24_s12, [#allocation3]  }
   0x9   :  { %s61_s17 = sshll.u32 %s447_s5, 4  ;;  %s375_s18 = smov [#allocation7]   ;;  %s62_s17 = int_to_ptr.hbm [resolvable:$true] %s61_s17 }
   0xa   :  { %s48_s19 = sshll.u32 %s375_s18, 4  ;;  %s376_s0 = smov [#allocation8]   ;;  %s49_s19 = int_to_ptr.vmem [resolvable:$true] %s48_s19 }
   0xb   :  { %54 = dma.hbm_to_vmem [thread:$0]  %s47_s15, 2048, %s49_s19, [#allocation6], %s372_s9, %s372_s9, %s373_s10  }
   0xc   :  { %s63_s20 = sshll.u32 %s376_s0, 4  ;;  %s64_s20 = int_to_ptr.vmem [resolvable:$true] %s63_s20 }
   0xd   :  { %69 = dma.hbm_to_vmem [thread:$0]  %s62_s17, 2048, %s64_s20, [#allocation9], %s372_s9, %s372_s9, %s373_s10  }
   0xe   :  { %363 = dma.done.wait [#allocation3], 128  }
   0xf   :  { %364 = vsyncadd [#allocation3], 4294967168 }
  0x10   :  { %365 = dma.done.wait [#allocation6], 4096  }
  0x11   :  { %366 = vsyncadd [#allocation6], 4294963200 }
  0x12   :  { %367 = dma.done.wait [#allocation9], 2048  }
  0x13   :  { %368 = vsyncadd [#allocation9], 4294965248  ;;  %v104_v0 = vld [vmem:[#allocation5 + $0x78] sm:$0xff]  ;;  %v103_v1 = vld [vmem:[#allocation5 + $0x70] sm:$0xff]  ;;  %s377_s24 = smov [#allocation10]   ;;  %s221_s28 = sshll.u32 %s449_s7, 4  ;;  %s222_s28 = int_to_ptr.hbm [resolvable:$true] %s221_s28 }
  0x14   :  { %109 = vmatpush.msra.mxu0 %v104_v0  ;;  %v102_v2 = vld [vmem:[#allocation5 + $0x68] sm:$0xff]  ;;  %v101_v3 = vld [vmem:[#allocation5 + $0x60] sm:$0xff]  ;;  %v146_v4 = vld [vmem:[#allocation7 + $0x78] sm:$0xff]  ;;  %s219_s25 = sshll.u32 %s377_s24, 4  ;;  %s220_s25 = int_to_ptr.vmem [resolvable:$true] %s219_s25 }
  0x15   :  { %v100_v5 = vld [vmem:[#allocation5 + $0x58] sm:$0xff]  ;;  %151 = vmatpush.msra.mxu1 %v146_v4  ;;  %v145_v6 = vld [vmem:[#allocation7 + $0x70] sm:$0xff]  ;;  %v144_v7 = vld [vmem:[#allocation7 + $0x68] sm:$0xff] }
  0x16   :  { %110 = vmatpush.msra.mxu0 %v103_v1  ;;  %v99_v8 = vld [vmem:[#allocation5 + $0x50] sm:$0xff]  ;;  %v143_v9 = vld [vmem:[#allocation7 + $0x60] sm:$0xff]  ;;  %v98_v10 = vld [vmem:[#allocation5 + $0x48] sm:$0xff] }
  0x17   :  { %152 = vmatpush.msra.mxu1 %v145_v6  ;;  %v142_v11 = vld [vmem:[#allocation7 + $0x58] sm:$0xff]  ;;  %v97_v12 = vld [vmem:[#allocation5 + $0x40] sm:$0xff]  ;;  %v141_v13 = vld [vmem:[#allocation7 + $0x50] sm:$0xff] }
  0x18   :  { %111 = vmatpush.msra.mxu0 %v102_v2  ;;  %v96_v14 = vld [vmem:[#allocation5 + $0x38] sm:$0xff]  ;;  %v140_v15 = vld [vmem:[#allocation7 + $0x48] sm:$0xff]  ;;  %v95_v16 = vld [vmem:[#allocation5 + $0x30] sm:$0xff] }
  0x19   :  { %153 = vmatpush.msra.mxu1 %v144_v7  ;;  %v139_v17 = vld [vmem:[#allocation7 + $0x40] sm:$0xff]  ;;  %v94_v18 = vld [vmem:[#allocation5 + $0x28] sm:$0xff]  ;;  %v138_v19 = vld [vmem:[#allocation7 + $0x38] sm:$0xff] }
  0x1a   :  { %112 = vmatpush.msra.mxu0 %v101_v3  ;;  %v93_v20 = vld [vmem:[#allocation5 + $0x20] sm:$0xff]  ;;  %v137_v21 = vld [vmem:[#allocation7 + $0x30] sm:$0xff]  ;;  %v92_v22 = vld [vmem:[#allocation5 + $0x18] sm:$0xff] }
  0x1b   :  { %154 = vmatpush.msra.mxu1 %v143_v9  ;;  %v136_v23 = vld [vmem:[#allocation7 + $0x28] sm:$0xff]  ;;  %v91_v24 = vld [vmem:[#allocation5 + $0x10] sm:$0xff]  ;;  %v135_v25 = vld [vmem:[#allocation7 + $0x20] sm:$0xff] }
  0x1c   :  { %113 = vmatpush.msra.mxu0 %v100_v5  ;;  %v90_v26 = vld [vmem:[#allocation5 + $0x8] sm:$0xff]  ;;  %v89_v27 = vld [vmem:[#allocation5] sm:$0xff]  ;;  %v88_v28 = vld [vmem:[#allocation2] sm:$0xff] }
  0x1d   :  { %155 = vmatpush.msra.mxu1 %v142_v11  ;;  %v134_v29 = vld [vmem:[#allocation7 + $0x18] sm:$0xff]  ;;  %v133_v30 = vld [vmem:[#allocation7 + $0x10] sm:$0xff]  ;;  %v132_v31 = vld [vmem:[#allocation7 + $0x8] sm:$0xff] }
  0x1e   :  { %114 = vmatpush.msra.mxu0 %v99_v8  ;;  %v131_v32 = vld [vmem:[#allocation7] sm:$0xff]  ;;  %v188_v33 = vld [vmem:[#allocation8 + $0x78] sm:$0xff]  ;;  %v187_v34 = vld [vmem:[#allocation8 + $0x70] sm:$0xff] }
  0x1f   :  { %156 = vmatpush.msra.mxu1 %v141_v13  ;;  %193 = vmatpush.msra.mxu2 %v188_v33  ;;  %v186_v35 = vld [vmem:[#allocation8 + $0x68] sm:$0xff]  ;;  %v185_v36 = vld [vmem:[#allocation8 + $0x60] sm:$0xff]  ;;  %v184_v37 = vld [vmem:[#allocation8 + $0x58] sm:$0xff] }
  0x20   :  { %115 = vmatpush.msra.mxu0 %v98_v10  ;;  %v183_v38 = vld [vmem:[#allocation8 + $0x50] sm:$0xff]  ;;  %v182_v39 = vld [vmem:[#allocation8 + $0x48] sm:$0xff]  ;;  %v181_v40 = vld [vmem:[#allocation8 + $0x40] sm:$0xff] }
  0x21   :  { %157 = vmatpush.msra.mxu1 %v140_v15  ;;  %194 = vmatpush.msra.mxu2 %v187_v34  ;;  %v180_v41 = vld [vmem:[#allocation8 + $0x38] sm:$0xff]  ;;  %v179_v42 = vld [vmem:[#allocation8 + $0x30] sm:$0xff]  ;;  %v178_v43 = vld [vmem:[#allocation8 + $0x28] sm:$0xff] }
  0x22   :  { %116 = vmatpush.msra.mxu0 %v97_v12  ;;  %v177_v44 = vld [vmem:[#allocation8 + $0x20] sm:$0xff]  ;;  %v240_v45 = vld [vmem:[%s444_s2] ss:$0 sm:$0xff]  ;;  %v175_v51 = vld [vmem:[#allocation8 + $0x10] sm:$0xff] }
  0x23   :  { %158 = vmatpush.msra.mxu1 %v139_v17  ;;  %195 = vmatpush.msra.mxu2 %v186_v35  ;;  %v176_v50 = vld [vmem:[#allocation8 + $0x18] sm:$0xff]  ;;  %v174_v52 = vld [vmem:[#allocation8 + $0x8] sm:$0xff]  ;;  %v173_v53 = vld [vmem:[#allocation8] sm:$0xff] }
  0x24   :  { %117 = vmatpush.msra.mxu0 %v96_v14  ;;  %v241_v54 = vld [vmem:[%s446_s4] ss:$0 sm:$0xff] }
  0x25   :  { %159 = vmatpush.msra.mxu1 %v138_v19  ;;  %196 = vmatpush.msra.mxu2 %v185_v36  ;;  %v242_v59 = vld [vmem:[%s448_s6] ss:$0 sm:$0xff] }
  0x26   :  { %118 = vmatpush.msra.mxu0 %v95_v16 }
  0x27   :  { %160 = vmatpush.msra.mxu1 %v137_v21  ;;  %197 = vmatpush.msra.mxu2 %v184_v37 }
  0x28   :  { %119 = vmatpush.msra.mxu0 %v94_v18 }
  0x29   :  { %161 = vmatpush.msra.mxu1 %v136_v23  ;;  %198 = vmatpush.msra.mxu2 %v183_v38 }
  0x2a   :  { %120 = vmatpush.msra.mxu0 %v93_v20 }
  0x2b   :  { %162 = vmatpush.msra.mxu1 %v135_v25  ;;  %199 = vmatpush.msra.mxu2 %v182_v39 }
  0x2c   :  { %121 = vmatpush.msra.mxu0 %v92_v22 }
  0x2d   :  { %163 = vmatpush.msra.mxu1 %v134_v29  ;;  %200 = vmatpush.msra.mxu2 %v181_v40 }
  0x2e   :  { %122 = vmatpush.msra.mxu0 %v91_v24 }
  0x2f   :  { %164 = vmatpush.msra.mxu1 %v133_v30  ;;  %201 = vmatpush.msra.mxu2 %v180_v41 }
  0x30   :  { %123 = vmatpush.msra.mxu0 %v90_v26 }
  0x31   :  { %165 = vmatpush.msra.mxu1 %v132_v31  ;;  %202 = vmatpush.msra.mxu2 %v179_v42 }
  0x32   :  { %124 = vmatpush.msra.mxu0 %v89_v27 }
  0x33   :  { %125 = vmatmul.f32.vlgmr.msra.gmra.mxu0 %v88_v28  ;;  %166 = vmatpush.msra.mxu1 %v131_v32 }
  0x34   :  { %203 = vmatpush.msra.mxu2 %v178_v43 }
  0x36   :  { %204 = vmatpush.msra.mxu2 %v177_v44 }
  0x38   :  { %205 = vmatpush.msra.mxu2 %v176_v50 }
  0x3a   :  { %206 = vmatpush.msra.mxu2 %v175_v51 }
  0x3c   :  { %207 = vmatpush.msra.mxu2 %v174_v52 }
  0x3e   :  { %208 = vmatpush.msra.mxu2 %v173_v53 }
  0xb0   :  { %v126_v46 = vpop.f32.mrf.mxu0 }
  0xb1   :  { %v127_v47 = vadd.f32 %v240_v45, %v126_v46 }
  0xb3   :  { %v129_v48 = vmul.f32 0.01, %v127_v47 }
  0xb5   :  { %v130_v49 = vmax.f32 %v127_v47, %v129_v48 }
  0xb7   :  { %167 = vmatmul.f32.vlgmr.msra.gmra.mxu1 %v130_v49 }
 0x134   :  { %v168_v55 = vpop.f32.mrf.mxu1 }
 0x135   :  { %v169_v56 = vadd.f32 %v241_v54, %v168_v55 }
 0x137   :  { %v171_v57 = vmul.f32 0.01, %v169_v56 }
 0x139   :  { %v172_v58 = vmax.f32 %v169_v56, %v171_v57 }
 0x13b   :  { %209 = vmatmul.f32.vlgmr.msra.gmra.mxu2 %v172_v58 }
 0x1be   :  { %v210_v60 = vpop.f32.mrf.mxu2 }
 0x1bf   :  { %v211_v61 = vadd.f32 %v242_v59, %v210_v60 }
 0x1c1   :  { %213 = vst [vmem:[#allocation10] sm:$0xff] %v211_v61 }
 0x1c2   :  { %224 = dma.vmem_to_hbm [thread:$0]  %s220_s25, 128, %s222_s28, [#allocation4]  }
 0x1c3   :  { %369 = dma.done.wait [#allocation4], 128  }
 0x1c4   :  { %370 = vsyncadd [#allocation4], 4294967168 }
 0x1c5   :  { %229 = vsyncpa [#allocation3], 1 }
 0x1c6   :  { %230 = vsyncpa [#allocation6], 1 }
 0x1c7   :  { %231 = vsyncpa [#allocation9], 1 }
 0x1c8   :  { %232 = vsyncpa [#allocation4], 1 }

</bundles_post_ra>
